<compile_context>
chip_gen: v6e
topology: v6e:2x2x1
jax: 0.10.0
libtpu: 0.0.40
codegen_flags: <defaults>
</compile_context>

<pallas_src>
import functools

import jax
import jax.numpy as jnp
from jax.experimental import pallas as pl
from jax.experimental.pallas import tpu as pltpu

# Eval-mode RReLU negative slope = (lower + upper) / 2
_LOWER = 0.2
_UPPER = 0.3333
_NEG_SLOPE = (_LOWER + _UPPER) / 2.0  # 0.26665

_LANES = 128
_SUBLANES = 8


def _mse_rrelu_kernel(x_ref, y_ref, o_ref, acc_ref, *,
                      inv_n, n_rows_valid, tiles_per_chunk, needs_mask):
    """Per chunk: accumulate sum((rrelu(x-y))^2) into a VMEM vector accumulator;
    on the last tile fold to an (8,128) partial and scale by 1/N."""
    i = pl.program_id(0)   # parallel chunk (megacore axis on v7x)
    j = pl.program_id(1)   # sequential tile within the chunk

    @pl.when(j == 0)
    def _init():
        acc_ref[...] = jnp.zeros_like(acc_ref)

    d = x_ref[...].astype(jnp.float32) - y_ref[...].astype(jnp.float32)
    r = jnp.where(d >= 0, d, d * jnp.float32(_NEG_SLOPE))
    sq = r * r

    if needs_mask:
        # Zero-out rows past the end of the real data (unspecified values from
        # the partially out-of-bounds last block).
        blk = i * tiles_per_chunk + j
        rows = jax.lax.broadcasted_iota(jnp.int32, sq.shape, 0) + blk * sq.shape[0]
        sq = jnp.where(rows < n_rows_valid, sq, jnp.float32(0.0))

    acc_ref[...] += sq

    @pl.when(j == pl.num_programs(1) - 1)
    def _finalize():
        partial = acc_ref[...].reshape(-1, _SUBLANES, _LANES).sum(axis=0)
        o_ref[...] = partial * jnp.float32(inv_n)


def my_mse_loss(x, y, *, rows_per_tile=1024):
    """JAX/Pallas equivalent of My_MSE_loss.forward(x, y) (eval-mode RReLU)."""
    assert x.shape == y.shape, "x and y must have the same shape"
    n_total = x.size

    # Flatten (free reshape); keep native dtype, kernel upcasts per-tile.
    xf = jnp.ravel(x)
    yf = jnp.ravel(y)

    n_rows = pl.cdiv(n_total, _LANES)
    pad = n_rows * _LANES - n_total
    if pad:
        # Only the (<128 element) remainder; rrelu(0)^2 == 0 so it is harmless.
        xf = jnp.pad(xf, (0, pad))
        yf = jnp.pad(yf, (0, pad))
    x2d = xf.reshape(n_rows, _LANES)
    y2d = yf.reshape(n_rows, _LANES)

    # Block rows: multiple of 8 (sublanes), no larger than needed.
    rpt = min(int(rows_per_tile), pl.cdiv(n_rows, _SUBLANES) * _SUBLANES)
    rpt = max(_SUBLANES, (rpt // _SUBLANES) * _SUBLANES)
    n_tiles = pl.cdiv(n_rows, rpt)
    needs_mask = (n_tiles * rpt != n_rows)

    # v7x: split the tile stream across the 2 TensorCores when it divides
    # cleanly; on single-core chips the parallel axis just loops.
    if n_tiles % 2 == 0:
        n_par, tpc = 2, n_tiles // 2
    else:
        n_par, tpc = 1, n_tiles

    kernel = functools.partial(
        _mse_rrelu_kernel,
        inv_n=1.0 / float(n_total),
        n_rows_valid=n_rows,
        tiles_per_chunk=tpc,
        needs_mask=needs_mask,
    )

    in_spec = pl.BlockSpec((rpt, _LANES), lambda i, j: (i * tpc + j, 0))

    partials = pl.pallas_call(
        kernel,
        out_shape=jax.ShapeDtypeStruct((n_par * _SUBLANES, _LANES), jnp.float32),
        grid_spec=pltpu.PrefetchScalarGridSpec(
            num_scalar_prefetch=0,
            grid=(n_par, tpc),
            in_specs=[in_spec, in_spec],
            out_specs=pl.BlockSpec((_SUBLANES, _LANES), lambda i, j: (i, 0)),
            scratch_shapes=[pltpu.VMEM((rpt, _LANES), jnp.float32)],
        ),
        compiler_params=pltpu.CompilerParams(
            dimension_semantics=("parallel", "arbitrary"),
        ),
    )(x2d, y2d)

    # Tiny final reduction over the per-chunk (8,128) partials (already 1/N-scaled).
    return jnp.sum(partials)


def _reference(x, y):
    d = x.astype(jnp.float32) - y.astype(jnp.float32)
    r = jnp.where(d >= 0, d, d * _NEG_SLOPE)
    return jnp.mean(r * r)


if __name__ == "__main__":
    key = jax.random.PRNGKey(0)
    kx, ky = jax.random.split(key)
    # Small NCHW-shaped inputs consistent with a typical use of the loss.
    x = jax.random.normal(kx, (2, 4, 16, 16), dtype=jnp.float32)
    y = jax.random.normal(ky, (2, 4, 16, 16), dtype=jnp.float32)

    out = my_mse_loss(x, y)
    out = jax.block_until_ready(out)

    ref = _reference(x, y)
    assert jnp.allclose(out, ref, rtol=1e-5, atol=1e-6), (out, ref)
    print("KERNEL_OK")
</pallas_src>

<mosaic_0001>
module attributes {stable_mosaic.version = 11 : i64} {
  func.func @_mse_rrelu_kernel(%arg0: i32, %arg1: i32, %arg2: memref<16x128xf32, #tpu.memory_space<vmem>>, %arg3: memref<16x128xf32, #tpu.memory_space<vmem>>, %arg4: memref<8x128xf32, #tpu.memory_space<vmem>>, %arg5: memref<16x128xf32, #tpu.memory_space<vmem>>) attributes {dimension_semantics = [#tpu.dimension_semantics<parallel>, #tpu.dimension_semantics<arbitrary>], iteration_bounds = array<i64: 1, 1>, scalar_prefetch = 0 : i64, scratch_operands = 1 : i64, tpu.core_type = #tpu.core_type<tc>, window_params = [{transform_indices = @transform_0, window_bounds = array<i64: 16, 128>}, {transform_indices = @transform_1, window_bounds = array<i64: 16, 128>}, {transform_indices = @transform_2, window_bounds = array<i64: 8, 128>}]} {
    %c0_i32 = arith.constant 0 : i32
    %0 = arith.cmpi eq, %arg1, %c0_i32 : i32
    %1 = arith.extui %0 : i1 to i32
    %c0_i32_0 = arith.constant 0 : i32
    %2 = arith.cmpi ne, %1, %c0_i32_0 : i32
    scf.if %2 {
      %cst_11 = arith.constant 0.000000e+00 : f32
      %18 = vector.broadcast %cst_11 : f32 to vector<16x128xf32>
      %c0_12 = arith.constant 0 : index
      %c0_13 = arith.constant 0 : index
      %19 = vector.load %arg5[%c0_12, %c0_13] : memref<16x128xf32, #tpu.memory_space<vmem>>, vector<16x128xf32>
      tpu.vector_store %arg5[%c0_12, %c0_13], %18 {strides = array<i32>} : memref<16x128xf32, #tpu.memory_space<vmem>>, vector<16x128xf32>,
    } else {
    }
    %c0 = arith.constant 0 : index
    %c0_1 = arith.constant 0 : index
    %3 = vector.load %arg2[%c0, %c0_1] : memref<16x128xf32, #tpu.memory_space<vmem>>, vector<16x128xf32>
    %c0_2 = arith.constant 0 : index
    %c0_3 = arith.constant 0 : index
    %4 = vector.load %arg3[%c0_2, %c0_3] : memref<16x128xf32, #tpu.memory_space<vmem>>, vector<16x128xf32>
    %5 = arith.subf %3, %4 : vector<16x128xf32>
    %cst = arith.constant 0.000000e+00 : f32
    %6 = vector.broadcast %cst : f32 to vector<16x128xf32>
    %7 = arith.cmpf oge, %5, %6 : vector<16x128xf32>
    %cst_4 = arith.constant 2.666500e-01 : f32
    %8 = vector.broadcast %cst_4 : f32 to vector<16x128xf32>
    %9 = arith.mulf %5, %8 : vector<16x128xf32>
    %10 = arith.select %7, %5, %9 : vector<16x128xi1>, vector<16x128xf32>
    %11 = arith.mulf %10, %10 : vector<16x128xf32>
    %c0_5 = arith.constant 0 : index
    %c0_6 = arith.constant 0 : index
    %12 = vector.load %arg5[%c0_5, %c0_6] : memref<16x128xf32, #tpu.memory_space<vmem>>, vector<16x128xf32>
    %13 = arith.addf %12, %11 : vector<16x128xf32>
    %c0_7 = arith.constant 0 : index
    %c0_8 = arith.constant 0 : index
    %14 = vector.load %arg5[%c0_7, %c0_8] : memref<16x128xf32, #tpu.memory_space<vmem>>, vector<16x128xf32>
    tpu.vector_store %arg5[%c0_7, %c0_8], %13 {strides = array<i32>} : memref<16x128xf32, #tpu.memory_space<vmem>>, vector<16x128xf32>,
    %c0_i32_9 = arith.constant 0 : i32
    %15 = arith.cmpi eq, %arg1, %c0_i32_9 : i32
    %16 = arith.extui %15 : i1 to i32
    %c0_i32_10 = arith.constant 0 : i32
    %17 = arith.cmpi ne, %16, %c0_i32_10 : i32
    scf.if %17 {
      %c0_11 = arith.constant 0 : index
      %c0_12 = arith.constant 0 : index
      %18 = vector.load %arg5[%c0_11, %c0_12] : memref<16x128xf32, #tpu.memory_space<vmem>>, vector<16x128xf32>
      %19 = vector.shape_cast %18 : vector<16x128xf32> to vector<2x8x128xf32>
      %cst_13 = arith.constant dense<0.000000e+00> : vector<8x128xf32>
      %20 = vector.multi_reduction <add>, %19, %cst_13 [0] : vector<2x8x128xf32> to vector<8x128xf32>
      %cst_14 = arith.constant 4.8828125E-4 : f32
      %21 = vector.broadcast %cst_14 : f32 to vector<8x128xf32>
      %22 = arith.mulf %20, %21 : vector<8x128xf32>
      %c0_15 = arith.constant 0 : index
      %c0_16 = arith.constant 0 : index
      %23 = vector.load %arg4[%c0_15, %c0_16] : memref<8x128xf32, #tpu.memory_space<vmem>>, vector<8x128xf32>
      tpu.vector_store %arg4[%c0_15, %c0_16], %22 {strides = array<i32>} : memref<8x128xf32, #tpu.memory_space<vmem>>, vector<8x128xf32>,
    } else {
    }
    return
  }
  func.func @transform_0(%arg0: i32, %arg1: i32) -> (i32, i32) {
    %c1_i32 = arith.constant 1 : i32
    %0 = arith.muli %arg0, %c1_i32 : i32
    %1 = arith.addi %0, %arg1 : i32
    %c0_i32 = arith.constant 0 : i32
    %c0_i32_0 = arith.constant 0 : i32
    return %1, %c0_i32 : i32, i32
  }
  func.func @transform_1(%arg0: i32, %arg1: i32) -> (i32, i32) {
    %c1_i32 = arith.constant 1 : i32
    %0 = arith.muli %arg0, %c1_i32 : i32
    %1 = arith.addi %0, %arg1 : i32
    %c0_i32 = arith.constant 0 : i32
    %c0_i32_0 = arith.constant 0 : i32
    return %1, %c0_i32 : i32, i32
  }
  func.func @transform_2(%arg0: i32, %arg1: i32) -> (i32, i32) {
    %c0_i32 = arith.constant 0 : i32
    %c0_i32_0 = arith.constant 0 : i32
    return %arg0, %c0_i32 : i32, i32
  }
}

</mosaic_0001>

<bundles_post_ra>
// kernel: tpu_custom_call.1
= control target key start
LH: loop header
LB: loop body
LE: loop exit
PB: predicated region body
PF: predicated region fallthrough
CT: control target
= control target key end

     0   :  { %7 = vsyncpa [#allocation4], 0  ;;  %s202_s0 = inlined_call_operand.hbm [shape: f32[16,128], index: 0, kind: input, shape index: {}]   ;;  %s203_s1 = inlined_call_operand.hbm [shape: f32[16,128], index: 1, kind: input, shape index: {}]   ;;  %s204_s2 = inlined_call_operand.hbm [shape: f32[8,128], index: 2, kind: output, shape index: {}]  }
   0x1   :  { %8 = vsyncpa [#allocation7], 0 }
   0x2   :  { %9 = vsyncpa [#allocation5], 0  ;;  %s173_s9 = smov [#allocation3]  }
   0x3   :  { %s19_s10 = sshll.u32 %s173_s9, 4  ;;  %s20_s10 = int_to_ptr.vmem [resolvable:$true] %s19_s10 }
   0x4   :  { %s115_s11 = scalar_lea.vmem %s20_s10, 256  ;;  %p120_p1 = scmp.lt.s32.totalorder %s20_s10, %s20_s10 }
   0x5   :  { %p116_p0 = scmp.ne.s32.totalorder %s20_s10, %s115_s11  ;;  %p121_p2 = scmp.lt.s32.totalorder %s115_s11, %s115_s11 }
   0x7   :  { %p122_p3 = por %p121_p2, %p120_p1 }
   0x9   :  { %p123_p4 = pnand %p122_p3, %p116_p0 }
   0xb   :  { %126 = shalt.err (!%p123_p4)
}
   0xc   :  { %s174_s12 = smov 128   ;;  %s175_s13 = smov 8  }
   0xd   :  { %25 = dma.hbm_to_vmem [thread:$0]  %s202_s0, 256, %s20_s10, [#allocation4], %s174_s12, %s174_s12, %s175_s13  }
   0xe   :  { %s176_s16 = smov [#allocation6]  }
   0xf   :  { %s35_s17 = sshll.u32 %s176_s16, 4  ;;  %s36_s17 = int_to_ptr.vmem [resolvable:$true] %s35_s17 }
  0x10   :  { %s135_s18 = scalar_lea.vmem %s36_s17, 256  ;;  %p140_p6 = scmp.lt.s32.totalorder %s36_s17, %s36_s17 }
  0x11   :  { %p136_p5 = scmp.ne.s32.totalorder %s36_s17, %s135_s18  ;;  %p141_p7 = scmp.lt.s32.totalorder %s135_s18, %s135_s18 }
  0x13   :  { %p142_p8 = por %p141_p7, %p140_p6 }
  0x15   :  { %p143_p9 = pnand %p142_p8, %p136_p5 }
  0x17   :  { %146 = shalt.err (!%p143_p9)
}
  0x18   :  { %41 = dma.hbm_to_vmem [thread:$0]  %s203_s1, 256, %s36_s17, [#allocation7], %s174_s12, %s174_s12, %s175_s13  }
  0x19   :  { %167 = dma.done.wait [#allocation4], 256  }
  0x1a   :  { %168 = vsyncadd [#allocation4], 4294967040 }
  0x1b   :  { %169 = dma.done.wait [#allocation7], 256  }
  0x1c   :  { %170 = vsyncadd [#allocation7], 4294967040  ;;  %v58_v0 = vld [vmem:[#allocation3] sm:$0xff]  ;;  %v59_v1 = vld [vmem:[#allocation3 + $0x8] sm:$0xff]  ;;  %s177_s0 = smov [#allocation8]  }
  0x1d   :  { %v60_v2 = vld [vmem:[#allocation6] sm:$0xff]  ;;  %v61_v3 = vld [vmem:[#allocation6 + $0x8] sm:$0xff]  ;;  %s92_s1 = sshll.u32 %s177_s0, 4  ;;  %s93_s1 = int_to_ptr.vmem [resolvable:$true] %s92_s1 }
  0x1e   :  { %v62_v4 = vsub.f32 %v58_v0, %v60_v2  ;;  %v63_v5 = vsub.f32 %v59_v1, %v61_v3  ;;  %s147_s21 = scalar_lea.vmem %s93_s1, 128  ;;  %p152_p11 = scmp.lt.s32.totalorder %s93_s1, %s93_s1 }
  0x1f   :  { %p148_p10 = scmp.ne.s32.totalorder %s93_s1, %s147_s21  ;;  %p153_p12 = scmp.lt.s32.totalorder %s147_s21, %s147_s21 }
  0x20   :  { %vm64_vm0 = vcmp.ge.f32.partialorder %v62_v4, 0.0  ;;  %v66_v6 = vmul.f32 0.26665, %v62_v4  ;;  %vm65_vm1 = vcmp.ge.f32.partialorder %v63_v5, 0.0  ;;  %v67_v7 = vmul.f32 0.26665, %v63_v5 }
  0x21   :  { %p154_p13 = por %p153_p12, %p152_p11 }
  0x22   :  { %v68_v8 = vsel %vm64_vm0, %v62_v4, %v66_v6  ;;  %v69_v9 = vsel %vm65_vm1, %v63_v5, %v67_v7 }
  0x23   :  { %v70_v10 = vmul.f32 %v68_v8, %v68_v8  ;;  %v71_v11 = vmul.f32 %v69_v9, %v69_v9  ;;  %p155_p0 = pnand %p154_p13, %p148_p10 }
  0x25   :  { %v83_v12 = vadd.f32 %v71_v11, %v70_v10 }
  0x27   :  { %v84_v13 = vmul.f32 0.00048828125, %v83_v12 }
  0x29   :  { %85 = vst [vmem:[#allocation8] sm:$0xff] %v84_v13 }
  0x2a   :  { %158 = shalt.err (!%p155_p0)
}
  0x2b   :  { %95 = dma.vmem_to_hbm [thread:$0]  %s93_s1, 128, %s204_s2, [#allocation5]  }
  0x2c   :  { %171 = dma.done.wait [#allocation5], 128  }
  0x2d   :  { %172 = vsyncadd [#allocation5], 4294967168 }
  0x2e   :  { %99 = vsyncpa [#allocation4], 1 }
  0x2f   :  { %100 = vsyncpa [#allocation7], 1 }
  0x30   :  { %101 = vsyncpa [#allocation5], 1 }

</bundles_post_ra>
